<compile_context>
chip_gen: v7x
topology: tpu7x:2x2x1
jax: 0.10.0
libtpu: 0.0.40
codegen_flags: <defaults>
</compile_context>

<pallas_src>
import functools

import jax
import jax.numpy as jnp
from jax import lax
from jax.experimental import pallas as pl
from jax.experimental.pallas import tpu as pltpu

_LANE = 128
_SUBLANE = 8
# Keep the whole (Out_p, In) weight VMEM-resident up to this many bytes; above
# that, stream the weight along K instead (critical on v7x's 64 MiB VMEM).
_RESIDENT_WEIGHT_BYTES = 16 * 1024 * 1024

# Tri-state cache: None = untried, True/False = whether pl.Buffered(1) lowers.
_SINGLE_BUFFER_OK = None


def _round_up(n, m):
    return ((n + m - 1) // m) * m


def _choose_batch_tile(B, block_m):
    """Pick (tm, padded_B); prefer no batch padding and >=2 tiles (v7x)."""
    block_m = max(_SUBLANE, _round_up(block_m, _SUBLANE))  # keep (8, .) legal
    if B <= block_m:
        # Split a big single tile in two so the "parallel" batch axis can span
        # both v7x TensorCores; tiny batches stay one full-array block.
        if B >= 256 and B % (2 * _SUBLANE) == 0:
            return B // 2, B
        return B, B
    # Largest multiple-of-8 tile <= block_m that divides B exactly -> no pad.
    for t in range(block_m, _SUBLANE - 1, -_SUBLANE):
        if B % t == 0:
            return t, B
    # No clean divisor: pad the batch (rare; costs one extra pass over x).
    return block_m, _round_up(B, block_m)


def _invariant_spec(block_shape, index_map, single_buffer):
    """BlockSpec for a grid-invariant operand (constant index_map)."""
    if single_buffer:
        # Resident across the grid -> double buffering is pure VMEM waste.
        return pl.BlockSpec(block_shape, index_map, pipeline_mode=pl.Buffered(1))
    return pl.BlockSpec(block_shape, index_map)


def _linear_resident_kernel(x_ref, w_ref, b_ref, o_ref):
    # x_ref: (tm, In)   w_ref: (Out_p, In) [PyTorch layout, grid-resident]
    # b_ref: (1, Out_p) o_ref: (tm, Out_p) lane-dense
    acc = lax.dot_general(
        x_ref[...], w_ref[...],
        dimension_numbers=(((1,), (1,)), ((), ())),   # x @ W.T on the MXU
        preferred_element_type=jnp.float32)
    o_ref[...] = (acc + b_ref[...]).astype(o_ref.dtype)


def _linear_ktiled_kernel(x_ref, w_ref, b_ref, o_ref, acc_ref):
    # Streams the weight along K; accumulates in an f32 VMEM scratch.
    k = pl.program_id(1)

    @pl.when(k == 0)
    def _init():
        acc_ref[...] = jnp.zeros_like(acc_ref)

    acc_ref[...] += lax.dot_general(
        x_ref[...], w_ref[...],
        dimension_numbers=(((1,), (1,)), ((), ())),
        preferred_element_type=jnp.float32)

    @pl.when(k == pl.num_programs(1) - 1)
    def _finalize():
        o_ref[...] = (acc_ref[...] + b_ref[...]).astype(o_ref.dtype)


@functools.partial(jax.jit,
                   static_argnames=("block_m", "single_buffer_invariants"))
def _forward(x, weight, bias, block_m, single_buffer_invariants):
    B, In = x.shape
    Out = weight.shape[0]
    out_dtype = x.dtype
    x_bytes = jnp.dtype(x.dtype).itemsize
    w_bytes = jnp.dtype(weight.dtype).itemsize
    o_bytes = jnp.dtype(out_dtype).itemsize

    # Lane-dense output: pad Out to a multiple of 128 only when needed so the
    # stores are full unmasked vst (zero-padded rows/bias keep the math exact).
    Out_p = _round_up(Out, _LANE)
    w_p = weight if Out_p == Out else jnp.pad(weight, ((0, Out_p - Out), (0, 0)))
    b_p = bias if Out_p == Out else jnp.pad(bias, (0, Out_p - Out))
    b2 = b_p.reshape(1, Out_p)

    tm, B_p = _choose_batch_tile(B, block_m)
    x_p = x if B_p == B else jnp.pad(x, ((0, B_p - B), (0, 0)))

    weight_bytes = Out_p * In * w_bytes
    inv_bufs = 1 if single_buffer_invariants else 2

    cost = pl.CostEstimate(
        flops=2 * B_p * Out_p * In,
        transcendentals=0,
        bytes_accessed=(B_p * In * x_bytes + Out_p * In * w_bytes
                        + Out_p * w_bytes + B_p * Out_p * o_bytes))

    if weight_bytes <= _RESIDENT_WEIGHT_BYTES or In % _LANE != 0:
        # ---------- resident-weight path ----------
        vmem_needed = (inv_bufs * (weight_bytes + Out_p * w_bytes)
                       + 2 * tm * In * x_bytes        # x tiles, double-buffered
                       + 2 * tm * Out_p * o_bytes)    # out tiles, double-buffered
        vmem_limit = min(max(int(vmem_needed * 1.25), 32 << 20), 128 << 20)
        grid = (B_p // tm,)
        out_p = pl.pallas_call(
            _linear_resident_kernel,
            out_shape=jax.ShapeDtypeStruct((B_p, Out_p), out_dtype),
            grid_spec=pltpu.PrefetchScalarGridSpec(
                num_scalar_prefetch=0,
                grid=grid,
                in_specs=[
                    pl.BlockSpec((tm, In), lambda i: (i, 0)),      # batch tile
                    _invariant_spec((Out_p, In), lambda i: (0, 0),  # weight
                                    single_buffer_invariants),
                    _invariant_spec((1, Out_p), lambda i: (0, 0),   # bias
                                    single_buffer_invariants),
                ],
                out_specs=pl.BlockSpec((tm, Out_p), lambda i: (i, 0)),
            ),
            compiler_params=pltpu.CompilerParams(
                dimension_semantics=("parallel",),
                vmem_limit_bytes=vmem_limit),
            cost_estimate=cost,
        )(x_p, w_p, b2)
    else:
        # ---------- K-tiled path (large In*Out: stream weight along K) ----------
        tk_cap = max(_LANE,
                     ((_RESIDENT_WEIGHT_BYTES // 2) // (Out_p * w_bytes))
                     // _LANE * _LANE)
        tk = _LANE
        for t in range(tk_cap, _LANE - 1, -_LANE):
            if In % t == 0:
                tk = t
                break
        vmem_needed = (2 * Out_p * tk * w_bytes        # streamed weight tiles
                       + inv_bufs * Out_p * w_bytes    # bias
                       + 2 * tm * tk * x_bytes
                       + 2 * tm * Out_p * o_bytes
                       + tm * Out_p * 4)               # f32 accumulator scratch
        vmem_limit = min(max(int(vmem_needed * 1.25), 32 << 20), 128 << 20)
        grid = (B_p // tm, In // tk)
        out_p = pl.pallas_call(
            _linear_ktiled_kernel,
            out_shape=jax.ShapeDtypeStruct((B_p, Out_p), out_dtype),
            grid_spec=pltpu.PrefetchScalarGridSpec(
                num_scalar_prefetch=0,
                grid=grid,
                in_specs=[
                    pl.BlockSpec((tm, tk), lambda i, k: (i, k)),
                    pl.BlockSpec((Out_p, tk), lambda i, k: (0, k)),
                    _invariant_spec((1, Out_p), lambda i, k: (0, 0),
                                    single_buffer_invariants),
                ],
                out_specs=pl.BlockSpec((tm, Out_p), lambda i, k: (i, 0)),
                scratch_shapes=[pltpu.VMEM((tm, Out_p), jnp.float32)],
            ),
            compiler_params=pltpu.CompilerParams(
                dimension_semantics=("parallel", "arbitrary"),
                vmem_limit_bytes=vmem_limit),
            cost_estimate=cost,
        )(x_p, w_p, b2)

    if B_p == B and Out_p == Out:
        return out_p                       # no padding -> no extra HBM pass
    return out_p[:B, :Out]


def logistic_regression_forward(x, weight, bias, block_m=512):
    """Forward of nn.Linear(In, Out): x:(B, In), weight:(Out, In), bias:(Out,)."""
    global _SINGLE_BUFFER_OK
    if _SINGLE_BUFFER_OK is None:
        try:
            out = _forward(x, weight, bias, block_m=block_m,
                           single_buffer_invariants=True)
            _SINGLE_BUFFER_OK = True
            return out
        except Exception:
            # This Pallas build rejected pipeline_mode=pl.Buffered(1) for the
            # grid-invariant operands; fall back to default double buffering.
            _SINGLE_BUFFER_OK = False
    return _forward(x, weight, bias, block_m=block_m,
                    single_buffer_invariants=_SINGLE_BUFFER_OK)


if __name__ == "__main__":
    # Small shapes consistent with nn.Linear(inputSize, outputSize).
    batch = 8
    input_size = 32
    output_size = 16

    key = jax.random.PRNGKey(0)
    kx, kw, kb = jax.random.split(key, 3)

    # Deterministic init mirroring PyTorch's U(-1/sqrt(in), 1/sqrt(in)).
    bound = 1.0 / (input_size ** 0.5)
    weight = jax.random.uniform(kw, (output_size, input_size), jnp.float32,
                                minval=-bound, maxval=bound)
    bias = jax.random.uniform(kb, (output_size,), jnp.float32,
                              minval=-bound, maxval=bound)
    x = jax.random.normal(kx, (batch, input_size), jnp.float32)

    out = logistic_regression_forward(x, weight, bias)
    out = jax.block_until_ready(out)

    # Sanity check against plain-JAX reference of the same math.
    ref = x @ weight.T + bias
    assert out.shape == (batch, output_size)
    assert jnp.allclose(out, ref, atol=1e-5, rtol=1e-5)

    print("KERNEL_OK")
</pallas_src>

<mosaic_0001>
module attributes {stable_mosaic.version = 11 : i64} {
  func.func @_linear_resident_kernel(%arg0: i32, %arg1: memref<8x32xf32, #tpu.memory_space<vmem>>, %arg2: memref<128x32xf32, #tpu.memory_space<vmem>>, %arg3: memref<1x128xf32, #tpu.memory_space<vmem>>, %arg4: memref<8x128xf32, #tpu.memory_space<vmem>>) attributes {dimension_semantics = [#tpu.dimension_semantics<parallel>], iteration_bounds = array<i64: 1>, scalar_prefetch = 0 : i64, scratch_operands = 0 : i64, tpu.core_type = #tpu.core_type<tc>, window_params = [{transform_indices = @transform_0, window_bounds = array<i64: 8, 32>}, {pipeline_mode = #tpu.pipeline_mode<synchronous>, transform_indices = @transform_1, window_bounds = array<i64: 128, 32>}, {pipeline_mode = #tpu.pipeline_mode<synchronous>, transform_indices = @transform_2, window_bounds = array<i64: 1, 128>}, {transform_indices = @transform_3, window_bounds = array<i64: 8, 128>}]} {
    %c0 = arith.constant 0 : index
    %c0_0 = arith.constant 0 : index
    %0 = vector.load %arg1[%c0, %c0_0] : memref<8x32xf32, #tpu.memory_space<vmem>>, vector<8x32xf32>
    %c0_1 = arith.constant 0 : index
    %c0_2 = arith.constant 0 : index
    %1 = vector.load %arg2[%c0_1, %c0_2] : memref<128x32xf32, #tpu.memory_space<vmem>>, vector<128x32xf32>
    %cst = arith.constant dense<0.000000e+00> : vector<8x128xf32>
    %2 = tpu.matmul %0, %1, %cst {dimension_numbers = #tpu.dot_dimension_numbers<[1], [1], [0], [0], [0, 0, 1, 0], [], []>} : vector<8x32xf32>, vector<128x32xf32>, vector<8x128xf32> -> vector<8x128xf32>
    %c0_3 = arith.constant 0 : index
    %c0_4 = arith.constant 0 : index
    %3 = vector.load %arg3[%c0_3, %c0_4] : memref<1x128xf32, #tpu.memory_space<vmem>>, vector<1x128xf32>
    %4 = vector.broadcast %3 : vector<1x128xf32> to vector<8x128xf32>
    %5 = arith.addf %2, %4 : vector<8x128xf32>
    %c0_5 = arith.constant 0 : index
    %c0_6 = arith.constant 0 : index
    %6 = vector.load %arg4[%c0_5, %c0_6] : memref<8x128xf32, #tpu.memory_space<vmem>>, vector<8x128xf32>
    tpu.vector_store %arg4[%c0_5, %c0_6], %5 {strides = array<i32>} : memref<8x128xf32, #tpu.memory_space<vmem>>, vector<8x128xf32>,
    return
  }
  func.func @transform_0(%arg0: i32) -> (i32, i32) {
    %c0_i32 = arith.constant 0 : i32
    %c0_i32_0 = arith.constant 0 : i32
    return %arg0, %c0_i32 : i32, i32
  }
  func.func @transform_1(%arg0: i32) -> (i32, i32) {
    %c0_i32 = arith.constant 0 : i32
    %c0_i32_0 = arith.constant 0 : i32
    %c0_i32_1 = arith.constant 0 : i32
    return %c0_i32, %c0_i32_0 : i32, i32
  }
  func.func @transform_2(%arg0: i32) -> (i32, i32) {
    %c0_i32 = arith.constant 0 : i32
    %c0_i32_0 = arith.constant 0 : i32
    %c0_i32_1 = arith.constant 0 : i32
    return %c0_i32, %c0_i32_0 : i32, i32
  }
  func.func @transform_3(%arg0: i32) -> (i32, i32) {
    %c0_i32 = arith.constant 0 : i32
    %c0_i32_0 = arith.constant 0 : i32
    return %arg0, %c0_i32 : i32, i32
  }
}

module attributes {stable_mosaic.version = 11 : i64} {
  func.func @_linear_resident_kernel(%arg0: i32, %arg1: memref<8x32xf32, #tpu.memory_space<vmem>>, %arg2: memref<128x32xf32, #tpu.memory_space<vmem>>, %arg3: memref<1x128xf32, #tpu.memory_space<vmem>>, %arg4: memref<8x128xf32, #tpu.memory_space<vmem>>) attributes {dimension_semantics = [#tpu.dimension_semantics<parallel>], iteration_bounds = array<i64: 1>, scalar_prefetch = 0 : i64, scratch_operands = 0 : i64, tpu.core_type = #tpu.core_type<tc>, window_params = [{transform_indices = @transform_0, window_bounds = array<i64: 8, 32>}, {pipeline_mode = #tpu.pipeline_mode<synchronous>, transform_indices = @transform_1, window_bounds = array<i64: 128, 32>}, {pipeline_mode = #tpu.pipeline_mode<synchronous>, transform_indices = @transform_2, window_bounds = array<i64: 1, 128>}, {transform_indices = @transform_3, window_bounds = array<i64: 8, 128>}]} {
    %c0 = arith.constant 0 : index
    %c0_0 = arith.constant 0 : index
    %0 = vector.load %arg1[%c0, %c0_0] : memref<8x32xf32, #tpu.memory_space<vmem>>, vector<8x32xf32>
    %c0_1 = arith.constant 0 : index
    %c0_2 = arith.constant 0 : index
    %1 = vector.load %arg2[%c0_1, %c0_2] : memref<128x32xf32, #tpu.memory_space<vmem>>, vector<128x32xf32>
    %cst = arith.constant dense<0.000000e+00> : vector<8x128xf32>
    %2 = tpu.matmul %0, %1, %cst {dimension_numbers = #tpu.dot_dimension_numbers<[1], [1], [0], [0], [0, 0, 1, 0], [], []>} : vector<8x32xf32>, vector<128x32xf32>, vector<8x128xf32> -> vector<8x128xf32>
    %c0_3 = arith.constant 0 : index
    %c0_4 = arith.constant 0 : index
    %3 = vector.load %arg3[%c0_3, %c0_4] : memref<1x128xf32, #tpu.memory_space<vmem>>, vector<1x128xf32>
    %4 = vector.broadcast %3 : vector<1x128xf32> to vector<8x128xf32>
    %5 = arith.addf %2, %4 : vector<8x128xf32>
    %c0_5 = arith.constant 0 : index
    %c0_6 = arith.constant 0 : index
    %6 = vector.load %arg4[%c0_5, %c0_6] : memref<8x128xf32, #tpu.memory_space<vmem>>, vector<8x128xf32>
    tpu.vector_store %arg4[%c0_5, %c0_6], %5 {strides = array<i32>} : memref<8x128xf32, #tpu.memory_space<vmem>>, vector<8x128xf32>,
    return
  }
  func.func @transform_0(%arg0: i32) -> (i32, i32) {
    %c0_i32 = arith.constant 0 : i32
    %c0_i32_0 = arith.constant 0 : i32
    return %arg0, %c0_i32 : i32, i32
  }
  func.func @transform_1(%arg0: i32) -> (i32, i32) {
    %c0_i32 = arith.constant 0 : i32
    %c0_i32_0 = arith.constant 0 : i32
    %c0_i32_1 = arith.constant 0 : i32
    return %c0_i32, %c0_i32_0 : i32, i32
  }
  func.func @transform_2(%arg0: i32) -> (i32, i32) {
    %c0_i32 = arith.constant 0 : i32
    %c0_i32_0 = arith.constant 0 : i32
    %c0_i32_1 = arith.constant 0 : i32
    return %c0_i32, %c0_i32_0 : i32, i32
  }
  func.func @transform_3(%arg0: i32) -> (i32, i32) {
    %c0_i32 = arith.constant 0 : i32
    %c0_i32_0 = arith.constant 0 : i32
    return %arg0, %c0_i32 : i32, i32
  }
}

</mosaic_0001>

<bundles_post_ra>
// kernel: _forward.1
= control target key start
LH: loop header
LB: loop body
LE: loop exit
PB: predicated region body
PF: predicated region fallthrough
CT: control target
= control target key end

     0   :  { %vm39_vm0 = vcmask 261120   ;;  %v306_v2 = vmov 0.0|0.0   ;;  %vm307_vm2 = vmmov 0   ;;  %v308_v5 = vmov 0.0   ;;  %s419_s0 = inlined_call_operand.vmem [shape: f32[8,32], index: 0, kind: input, shape index: {}]   ;;  %s420_s1 = inlined_call_operand.vmem [shape: f32[128,32], index: 1, kind: input, shape index: {}]   ;;  %s421_s2 = inlined_call_operand.vmem [shape: f32[1,128], index: 2, kind: input, shape index: {}]   ;;  %s422_s3 = inlined_call_operand.hbm [shape: f32[8,128], index: 3, kind: output, shape index: {}]  }
   0x1   :  { %v16_v0 = vld [vmem:[%s420_s1] sm:$0xff]  ;;  %v17_v1 = vld [vmem:[%s420_s1 + $0x8] sm:$0xff]  ;;  %246 = vmatprep.subr.bf16.mxu0 %v306_v2  ;;  %vm338_vm1 = vmpackc.low %vm39_vm0, %vm39_vm0  ;;  %243 = vmatprep.mubr.msk.f32.mxu0 %vm307_vm2, %v308_v5 }
   0x2   :  { %v247_v3 = vpack.c.bf16 %v17_v1, %v16_v0  ;;  %v18_v6 = vld [vmem:[%s420_s1 + $0x10] sm:$0xff]  ;;  %v19_v7 = vld [vmem:[%s420_s1 + $0x18] sm:$0xff] }
   0x4   :  { %249 = vmatpush3.bf16.xpose.msk.msra.mxu0 %vm338_vm1, %v247_v3 }
   0x5   :  { %250 = vmatprep.subr.bf16.mxu0 %v306_v2 }
   0x6   :  { %8 = vsyncpa [#allocation3], 0  ;;  %v251_v8 = vpack.c.bf16 %v19_v7, %v18_v6  ;;  %v20_v9 = vld [vmem:[%s420_s1 + $0x20] sm:$0xff]  ;;  %v21_v10 = vld [vmem:[%s420_s1 + $0x28] sm:$0xff]  ;;  %s309_s21 = smov [#allocation2]  }
   0x7   :  { %v255_v11 = vpack.c.bf16 %v21_v10, %v20_v9  ;;  %v22_v12 = vld [vmem:[%s420_s1 + $0x30] sm:$0xff]  ;;  %v23_v13 = vld [vmem:[%s420_s1 + $0x38] sm:$0xff]  ;;  %v24_v15 = vld [vmem:[%s420_s1 + $0x40] sm:$0xff]  ;;  %s168_s22 = sshll.u32 %s309_s21, 4  ;;  %s169_s22 = int_to_ptr.vmem [resolvable:$true] %s168_s22 }
   0x8   :  { %v259_v14 = vpack.c.bf16 %v23_v13, %v22_v12  ;;  %v25_v16 = vld [vmem:[%s420_s1 + $0x48] sm:$0xff]  ;;  %v26_v18 = vld [vmem:[%s420_s1 + $0x50] sm:$0xff]  ;;  %v27_v19 = vld [vmem:[%s420_s1 + $0x58] sm:$0xff]  ;;  %p287_p1 = scmp.lt.s32.totalorder %s169_s22, %s169_s22 }
   0x9   :  { %v263_v17 = vpack.c.bf16 %v25_v16, %v24_v15  ;;  %v267_v20 = vpack.c.bf16 %v27_v19, %v26_v18  ;;  %v28_v21 = vld [vmem:[%s420_s1 + $0x60] sm:$0xff]  ;;  %v29_v22 = vld [vmem:[%s420_s1 + $0x68] sm:$0xff]  ;;  %v30_v24 = vld [vmem:[%s420_s1 + $0x70] sm:$0xff] }
   0xa   :  { %v271_v23 = vpack.c.bf16 %v29_v22, %v28_v21  ;;  %v31_v25 = vld [vmem:[%s420_s1 + $0x78] sm:$0xff]  ;;  %v15_v27 = vld [vmem:[%s419_s0] sm:$0xff]  ;;  %s282_s1 = scalar_lea.vmem %s169_s22, 128 }
   0xb   :  { %v275_v26 = vpack.c.bf16 %v31_v25, %v30_v24  ;;  %v176_v28 = vld [vmem:[%s421_s2] ss:$0 sm:$0xff]  ;;  %p283_p0 = scmp.ne.s32.totalorder %s169_s22, %s282_s1  ;;  %p288_p2 = scmp.lt.s32.totalorder %s282_s1, %s282_s1 }
   0xc   :  { %253 = vmatpush3.bf16.xpose.msk.msra.mxu0 %vm338_vm1, %v251_v8 }
   0xd   :  { %254 = vmatprep.subr.bf16.mxu0 %v306_v2  ;;  %p289_p3 = por %p288_p2, %p287_p1 }
   0xf   :  { %p290_p4 = pnand %p289_p3, %p283_p0 }
  0x14   :  { %257 = vmatpush3.bf16.xpose.msk.msra.mxu0 %vm338_vm1, %v255_v11 }
  0x15   :  { %258 = vmatprep.subr.bf16.mxu0 %v306_v2 }
  0x1c   :  { %261 = vmatpush3.bf16.xpose.msk.msra.mxu0 %vm338_vm1, %v259_v14 }
  0x1d   :  { %262 = vmatprep.subr.bf16.mxu0 %v306_v2 }
  0x24   :  { %265 = vmatpush3.bf16.xpose.msk.msra.mxu0 %vm338_vm1, %v263_v17 }
  0x25   :  { %266 = vmatprep.subr.bf16.mxu0 %v306_v2 }
  0x2c   :  { %269 = vmatpush3.bf16.xpose.msk.msra.mxu0 %vm338_vm1, %v267_v20 }
  0x2d   :  { %270 = vmatprep.subr.bf16.mxu0 %v306_v2 }
  0x34   :  { %273 = vmatpush3.bf16.xpose.msk.msra.mxu0 %vm338_vm1, %v271_v23 }
  0x35   :  { %274 = vmatprep.subr.bf16.mxu0 %v306_v2 }
  0x3c   :  { %277 = vmatpush3.bf16.xpose.msk.msra.mxu0 %vm338_vm1, %v275_v26 }
  0x43   :  { %244 = vmatmul.mubr.msk.f32.vlgmr.msra.gmra.mrb[0].mxu0 %vm39_vm0, %v15_v27 }
 0x116   :  { %v157_v29 = vpop.f32.mrb[0].mxu0 }
 0x117   :  { %v158_v30 = vadd.f32 %v176_v28, %v157_v29  ;;  %v245_v31 = vpop.f32.mrb[1].mxu0 }
 0x119   :  { %161 = vst [vmem:[#allocation2] sm:$0xff] %v158_v30 }
 0x11a   :  { %293 = shalt.err (!%p290_p4)
}
 0x11b   :  { %s294_s24 = scalar_lea.hbm %s422_s3, 128 }
 0x11c   :  { %p295_p5 = scmp.ne.s32.totalorder %s422_s3, %s294_s24  ;;  %p298_p6 = scmp.lt.u32.totalorder %s294_s24, %s422_s3 }
 0x11e   :  { %p300_p7 = pnand %p298_p6, %p295_p5 }
 0x120   :  { %303 = shalt.err (!%p300_p7)
}
 0x121   :  { %171 = dma.vmem_to_hbm [thread:$0]  %s169_s22, 128, %s422_s3, [#allocation3]  }
 0x122   :  { %304 = dma.done.wait [#allocation3], 128  }
 0x123   :  { %305 = vsyncadd [#allocation3], 4294967168 }
 0x124   :  { %175 = vsyncpa [#allocation3], 1 }

// kernel: _forward.1
= control target key start
LH: loop header
LB: loop body
LE: loop exit
PB: predicated region body
PF: predicated region fallthrough
CT: control target
= control target key end

     0   :  { %vm39_vm0 = vcmask 261120   ;;  %v306_v2 = vmov 0.0|0.0   ;;  %vm307_vm2 = vmmov 0   ;;  %v308_v5 = vmov 0.0   ;;  %s419_s0 = inlined_call_operand.vmem [shape: f32[8,32], index: 0, kind: input, shape index: {}]   ;;  %s420_s1 = inlined_call_operand.vmem [shape: f32[128,32], index: 1, kind: input, shape index: {}]   ;;  %s421_s2 = inlined_call_operand.vmem [shape: f32[1,128], index: 2, kind: input, shape index: {}]   ;;  %s422_s3 = inlined_call_operand.hbm [shape: f32[8,128], index: 3, kind: output, shape index: {}]  }
   0x1   :  { %v16_v0 = vld [vmem:[%s420_s1] sm:$0xff]  ;;  %v17_v1 = vld [vmem:[%s420_s1 + $0x8] sm:$0xff]  ;;  %246 = vmatprep.subr.bf16.mxu0 %v306_v2  ;;  %vm338_vm1 = vmpackc.low %vm39_vm0, %vm39_vm0  ;;  %243 = vmatprep.mubr.msk.f32.mxu0 %vm307_vm2, %v308_v5 }
   0x2   :  { %v247_v3 = vpack.c.bf16 %v17_v1, %v16_v0  ;;  %v18_v6 = vld [vmem:[%s420_s1 + $0x10] sm:$0xff]  ;;  %v19_v7 = vld [vmem:[%s420_s1 + $0x18] sm:$0xff] }
   0x4   :  { %249 = vmatpush3.bf16.xpose.msk.msra.mxu0 %vm338_vm1, %v247_v3 }
   0x5   :  { %250 = vmatprep.subr.bf16.mxu0 %v306_v2 }
   0x6   :  { %8 = vsyncpa [#allocation3], 0  ;;  %v251_v8 = vpack.c.bf16 %v19_v7, %v18_v6  ;;  %v20_v9 = vld [vmem:[%s420_s1 + $0x20] sm:$0xff]  ;;  %v21_v10 = vld [vmem:[%s420_s1 + $0x28] sm:$0xff]  ;;  %s309_s21 = smov [#allocation2]  }
   0x7   :  { %v255_v11 = vpack.c.bf16 %v21_v10, %v20_v9  ;;  %v22_v12 = vld [vmem:[%s420_s1 + $0x30] sm:$0xff]  ;;  %v23_v13 = vld [vmem:[%s420_s1 + $0x38] sm:$0xff]  ;;  %v24_v15 = vld [vmem:[%s420_s1 + $0x40] sm:$0xff]  ;;  %s168_s22 = sshll.u32 %s309_s21, 4  ;;  %s169_s22 = int_to_ptr.vmem [resolvable:$true] %s168_s22 }
   0x8   :  { %v259_v14 = vpack.c.bf16 %v23_v13, %v22_v12  ;;  %v25_v16 = vld [vmem:[%s420_s1 + $0x48] sm:$0xff]  ;;  %v26_v18 = vld [vmem:[%s420_s1 + $0x50] sm:$0xff]  ;;  %v27_v19 = vld [vmem:[%s420_s1 + $0x58] sm:$0xff]  ;;  %p287_p1 = scmp.lt.s32.totalorder %s169_s22, %s169_s22 }
   0x9   :  { %v263_v17 = vpack.c.bf16 %v25_v16, %v24_v15  ;;  %v267_v20 = vpack.c.bf16 %v27_v19, %v26_v18  ;;  %v28_v21 = vld [vmem:[%s420_s1 + $0x60] sm:$0xff]  ;;  %v29_v22 = vld [vmem:[%s420_s1 + $0x68] sm:$0xff]  ;;  %v30_v24 = vld [vmem:[%s420_s1 + $0x70] sm:$0xff] }
   0xa   :  { %v271_v23 = vpack.c.bf16 %v29_v22, %v28_v21  ;;  %v31_v25 = vld [vmem:[%s420_s1 + $0x78] sm:$0xff]  ;;  %v15_v27 = vld [vmem:[%s419_s0] sm:$0xff]  ;;  %s282_s1 = scalar_lea.vmem %s169_s22, 128 }
   0xb   :  { %v275_v26 = vpack.c.bf16 %v31_v25, %v30_v24  ;;  %v176_v28 = vld [vmem:[%s421_s2] ss:$0 sm:$0xff]  ;;  %p283_p0 = scmp.ne.s32.totalorder %s169_s22, %s282_s1  ;;  %p288_p2 = scmp.lt.s32.totalorder %s282_s1, %s282_s1 }
   0xc   :  { %253 = vmatpush3.bf16.xpose.msk.msra.mxu0 %vm338_vm1, %v251_v8 }
   0xd   :  { %254 = vmatprep.subr.bf16.mxu0 %v306_v2  ;;  %p289_p3 = por %p288_p2, %p287_p1 }
   0xf   :  { %p290_p4 = pnand %p289_p3, %p283_p0 }
  0x14   :  { %257 = vmatpush3.bf16.xpose.msk.msra.mxu0 %vm338_vm1, %v255_v11 }
  0x15   :  { %258 = vmatprep.subr.bf16.mxu0 %v306_v2 }
  0x1c   :  { %261 = vmatpush3.bf16.xpose.msk.msra.mxu0 %vm338_vm1, %v259_v14 }
  0x1d   :  { %262 = vmatprep.subr.bf16.mxu0 %v306_v2 }
  0x24   :  { %265 = vmatpush3.bf16.xpose.msk.msra.mxu0 %vm338_vm1, %v263_v17 }
  0x25   :  { %266 = vmatprep.subr.bf16.mxu0 %v306_v2 }
  0x2c   :  { %269 = vmatpush3.bf16.xpose.msk.msra.mxu0 %vm338_vm1, %v267_v20 }
  0x2d   :  { %270 = vmatprep.subr.bf16.mxu0 %v306_v2 }
  0x34   :  { %273 = vmatpush3.bf16.xpose.msk.msra.mxu0 %vm338_vm1, %v271_v23 }
  0x35   :  { %274 = vmatprep.subr.bf16.mxu0 %v306_v2 }
  0x3c   :  { %277 = vmatpush3.bf16.xpose.msk.msra.mxu0 %vm338_vm1, %v275_v26 }
  0x43   :  { %244 = vmatmul.mubr.msk.f32.vlgmr.msra.gmra.mrb[0].mxu0 %vm39_vm0, %v15_v27 }
 0x116   :  { %v157_v29 = vpop.f32.mrb[0].mxu0 }
 0x117   :  { %v158_v30 = vadd.f32 %v176_v28, %v157_v29  ;;  %v245_v31 = vpop.f32.mrb[1].mxu0 }
 0x119   :  { %161 = vst [vmem:[#allocation2] sm:$0xff] %v158_v30 }
 0x11a   :  { %293 = shalt.err (!%p290_p4)
}
 0x11b   :  { %s294_s24 = scalar_lea.hbm %s422_s3, 128 }
 0x11c   :  { %p295_p5 = scmp.ne.s32.totalorder %s422_s3, %s294_s24  ;;  %p298_p6 = scmp.lt.u32.totalorder %s294_s24, %s422_s3 }
 0x11e   :  { %p300_p7 = pnand %p298_p6, %p295_p5 }
 0x120   :  { %303 = shalt.err (!%p300_p7)
}
 0x121   :  { %171 = dma.vmem_to_hbm [thread:$0]  %s169_s22, 128, %s422_s3, [#allocation3]  }
 0x122   :  { %304 = dma.done.wait [#allocation3], 128  }
 0x123   :  { %305 = vsyncadd [#allocation3], 4294967168 }
 0x124   :  { %175 = vsyncpa [#allocation3], 1 }

</bundles_post_ra>
